<compile_context>
chip_gen: v7x
topology: tpu7x:2x2x1
jax: 0.10.0
libtpu: 0.0.40
codegen_flags: <defaults>
</compile_context>

<pallas_src>
import functools

import numpy as np

import jax
import jax.numpy as jnp
from jax.experimental import pallas as pl
from jax.experimental.pallas import tpu as pltpu


def _round_up(x, m):
    return (x + m - 1) // m * m


def _freq_loss_kernel(kr_ref, ki_ref, out_ref, tgt_ref, acc_ref):
    """One grid step: masked power spectra of a slab of output/target images.

    kr_ref, ki_ref: (S^2, n_pad)  real / imag DFT matrix, mask-compressed cols
    out_ref, tgt_ref: (bsz, S^2)  f32 images, flattened row-major
    acc_ref: (bsz, n_pad)         f32 |P_out - P_tgt| accumulator (revisited
                                  across the "arbitrary" grid axis)
    """
    g = pl.program_id(1)

    @pl.when(g == 0)
    def _():
        acc_ref[...] = jnp.zeros_like(acc_ref)

    kr = kr_ref[...]
    ki = ki_ref[...]
    mm_dtype = kr.dtype
    # Cast to the matmul dtype in-kernel (inputs stay f32 in HBM).
    xo = out_ref[...].astype(mm_dtype)
    xt = tgt_ref[...].astype(mm_dtype)

    zor = jnp.dot(xo, kr, preferred_element_type=jnp.float32)
    zoi = jnp.dot(xo, ki, preferred_element_type=jnp.float32)
    ztr = jnp.dot(xt, kr, preferred_element_type=jnp.float32)
    zti = jnp.dot(xt, ki, preferred_element_type=jnp.float32)

    p_o = zor * zor + zoi * zoi          # masked frequencies only (cols kept)
    p_t = ztr * ztr + zti * zti
    # Elementwise partial sums only; the scalar reduction happens once in the
    # wrapper after the last grid step (no per-step XLU reduce / scalar store).
    acc_ref[...] += jnp.abs(p_o - p_t)


def _build_constants(s, radius, matmul_dtype):
    """Numpy (trace-time) construction of the mask-compressed DFT matrices."""
    s_sq = s * s
    kvec = np.arange(s, dtype=np.float64)
    ang = -2.0 * np.pi * np.outer(kvec, kvec) / s
    fr = np.cos(ang)
    fi = np.sin(ang)
    # fft2(X), flattened row-major:  z = x_flat @ kron(F, F)   (F symmetric).
    kr_full = np.kron(fr, fr) - np.kron(fi, fi)      # (S^2, S^2) real part
    ki_full = np.kron(fr, fi) + np.kron(fi, fr)      # (S^2, S^2) imag part

    # Circular mask exactly as FreqLoss.create_mask (torch meshgrid 'ij').
    coords = np.arange(-s / 2, s / 2, dtype=np.float64)
    xg, yg = np.meshgrid(coords, coords, indexing="ij")
    d = np.sqrt((xg + 0.5) ** 2 + (yg + 0.5) ** 2)
    mask = d <= radius
    # sum(fftshift(P) * mask) == sum(P * ifftshift(mask)) (permutation
    # invariance of the L1 sum), so keep only the surviving frequency columns.
    keep = np.flatnonzero(np.fft.ifftshift(mask).reshape(-1))
    n_keep = int(keep.size)
    n_pad = max(128, _round_up(max(n_keep, 1), 128))
    kr = np.zeros((s_sq, n_pad), dtype=np.float32)
    ki = np.zeros((s_sq, n_pad), dtype=np.float32)
    if n_keep:
        kr[:, :n_keep] = kr_full[:, keep]
        ki[:, :n_keep] = ki_full[:, keep]
    return (jnp.asarray(kr, dtype=matmul_dtype),
            jnp.asarray(ki, dtype=matmul_dtype),
            n_pad)


def _auto_num_splits():
    # Only v7x exposes two TensorCores per Pallas device; v5e/v6e have one,
    # so a 2-way "parallel" split there is pure serialized overhead.
    try:
        kind = jax.devices()[0].device_kind.lower()
    except Exception:
        return 1
    return 2 if "v7" in kind else 1


def _vmem_capacity_bytes():
    try:
        return int(pltpu.get_tpu_info().vmem_capacity_bytes)
    except Exception:
        return 64 * 1024 * 1024


@functools.partial(
    jax.jit,
    static_argnames=("radius", "matmul_dtype", "images_per_step", "num_splits"))
def freq_loss(output, target, radius, weight=1.0, *,
              matmul_dtype=jnp.bfloat16, images_per_step=256, num_splits=None):
    """Pallas implementation of FreqLoss.forward (mean-reduction L1).

    matmul_dtype=jnp.float32 keeps a tight-accuracy path (bf16 rounding happens
    before the squared-spectrum difference, so use f32 when output ~= target).
    """
    n, c, s, s2 = output.shape
    assert s == s2, "square images expected"
    assert output.shape == target.shape
    m = n * c
    s_sq = s * s

    kr, ki, n_pad = _build_constants(s, float(radius), matmul_dtype)

    # ---- generation-aware split & batching ---------------------------------
    if num_splits is None:
        num_splits = _auto_num_splits()
    bsz = min(_round_up(images_per_step, 8), _round_up(m, 8))

    # ---- VMEM budget: constants (single-buffered) + image blocks + acc -----
    vmem_cap = _vmem_capacity_bytes()
    mm_bytes = np.dtype(matmul_dtype).itemsize
    img_bytes = output.dtype.itemsize

    def _vmem_needed(b):
        const_b = 2 * s_sq * n_pad * mm_bytes              # Kr + Ki, Buffered(1)
        img_b = 2 * 2 * b * s_sq * img_bytes               # 2 inputs x 2 buffers
        acc_b = 2 * b * n_pad * 4                          # output block
        tmp_b = 6 * b * n_pad * 4                          # z / p temporaries
        return const_b + img_b + acc_b + tmp_b + (2 << 20)

    while bsz > 8 and _vmem_needed(bsz) > int(0.8 * vmem_cap):
        bsz = _round_up(bsz // 2, 8)
    vmem_limit = int(min(max(_vmem_needed(bsz), 16 << 20), int(0.9 * vmem_cap)))

    num_groups = (m + bsz - 1) // bsz
    num_splits = max(1, min(num_splits, num_groups))   # no all-zero slabs
    g_total = _round_up(num_groups, num_splits)
    g_per = g_total // num_splits
    m_pad = g_total * bsz      # zero pad rows: P_out == P_tgt == 0 -> diff 0.

    out_rows = output.reshape(m, s_sq)
    tgt_rows = target.reshape(m, s_sq)
    if m_pad != m:
        pad = ((0, m_pad - m), (0, 0))
        out_rows = jnp.pad(out_rows, pad)
        tgt_rows = jnp.pad(tgt_rows, pad)

    # Constants are never re-fetched (index map is always (0,0)) -> 1 buffer.
    const_spec = functools.partial(pl.BlockSpec, pipeline_mode=pl.Buffered(1))

    partial_sums = pl.pallas_call(
        _freq_loss_kernel,
        out_shape=jax.ShapeDtypeStruct((num_splits * bsz, n_pad), jnp.float32),
        grid=(num_splits, g_per),
        in_specs=[
            const_spec((s_sq, n_pad), lambda cs, g: (0, 0)),             # Kr
            const_spec((s_sq, n_pad), lambda cs, g: (0, 0)),             # Ki
            pl.BlockSpec((bsz, s_sq), lambda cs, g: (cs * g_per + g, 0)),  # out
            pl.BlockSpec((bsz, s_sq), lambda cs, g: (cs * g_per + g, 0)),  # tgt
        ],
        out_specs=pl.BlockSpec((bsz, n_pad), lambda cs, g: (cs, 0)),
        compiler_params=pltpu.CompilerParams(
            dimension_semantics=("parallel", "arbitrary"),
            vmem_limit_bytes=vmem_limit,
        ),
    )(kr, ki, out_rows, tgt_rows)

    # Final scalar reduction of the lane-dense per-core partials (tiny XLA op).
    total = jnp.sum(partial_sums)
    # nn.L1Loss default reduction='mean' over all N*C*S*S (unpadded) elements.
    return total / jnp.float32(m * s_sq) * jnp.asarray(weight, jnp.float32)


def _freq_loss_reference(output, target, radius, weight=1.0):
    """Pure-JAX reference mirroring the PyTorch module."""
    s = output.shape[-1]
    coords = jnp.arange(-s / 2, s / 2, dtype=jnp.float32)
    xg, yg = jnp.meshgrid(coords, coords, indexing="ij")
    d = jnp.sqrt((xg + 0.5) ** 2 + (yg + 0.5) ** 2)
    mask = (d <= radius).astype(jnp.float32)[None, None]

    def pspec(img):
        ft = jnp.fft.fft2(img)
        return jnp.fft.fftshift(jnp.abs(ft) ** 2, axes=(-2, -1))

    ps_o = pspec(output) * mask
    ps_t = pspec(target) * mask
    return jnp.mean(jnp.abs(ps_o - ps_t)) * weight


if __name__ == "__main__":
    key = jax.random.PRNGKey(0)
    k1, k2 = jax.random.split(key)
    N, C, S = 2, 4, 16
    radius = 5.0
    output = jax.random.normal(k1, (N, C, S, S), dtype=jnp.float32)
    target = jax.random.normal(k2, (N, C, S, S), dtype=jnp.float32)

    ref = _freq_loss_reference(output, target, radius, weight=1.0)
    jax.block_until_ready(ref)

    # f32 MXU path: validates the structure / mask folding at tight tolerance.
    loss_f32 = freq_loss(output, target, radius, weight=1.0,
                         matmul_dtype=jnp.float32)
    jax.block_until_ready(loss_f32)
    assert jnp.allclose(loss_f32, ref, rtol=1e-3, atol=1e-3), (loss_f32, ref)

    # bf16 MXU path (performance default): bf16 rounding of the DFT matrix and
    # images happens before the squared-spectrum difference, hence the looser
    # tolerance (keep the f32 path for output ~= target regimes).
    loss_bf16 = freq_loss(output, target, radius, weight=1.0,
                          matmul_dtype=jnp.bfloat16)
    jax.block_until_ready(loss_bf16)
    assert jnp.allclose(loss_bf16, ref, rtol=3e-2, atol=1e-2), (loss_bf16, ref)

    print("KERNEL_OK")
</pallas_src>

<mosaic_0001>
module attributes {stable_mosaic.version = 11 : i64} {
  func.func @_freq_loss_kernel(%arg0: i32, %arg1: i32, %arg2: memref<256x128xf32, #tpu.memory_space<vmem>>, %arg3: memref<256x128xf32, #tpu.memory_space<vmem>>, %arg4: memref<8x256xf32, #tpu.memory_space<vmem>>, %arg5: memref<8x256xf32, #tpu.memory_space<vmem>>, %arg6: memref<8x128xf32, #tpu.memory_space<vmem>>) attributes {dimension_semantics = [#tpu.dimension_semantics<parallel>, #tpu.dimension_semantics<arbitrary>], iteration_bounds = array<i64: 1, 1>, scalar_prefetch = 0 : i64, scratch_operands = 0 : i64, tpu.core_type = #tpu.core_type<tc>, window_params = [{pipeline_mode = #tpu.pipeline_mode<synchronous>, transform_indices = @transform_0, window_bounds = array<i64: 256, 128>}, {pipeline_mode = #tpu.pipeline_mode<synchronous>, transform_indices = @transform_1, window_bounds = array<i64: 256, 128>}, {transform_indices = @transform_2, window_bounds = array<i64: 8, 256>}, {transform_indices = @transform_3, window_bounds = array<i64: 8, 256>}, {transform_indices = @transform_4, window_bounds = array<i64: 8, 128>}]} {
    %c0_i32 = arith.constant 0 : i32
    %0 = arith.cmpi eq, %arg1, %c0_i32 : i32
    %1 = arith.extui %0 : i1 to i32
    %c0_i32_0 = arith.constant 0 : i32
    %2 = arith.cmpi ne, %1, %c0_i32_0 : i32
    scf.if %2 {
      %cst_15 = arith.constant 0.000000e+00 : f32
      %22 = vector.broadcast %cst_15 : f32 to vector<8x128xf32>
      %c0_16 = arith.constant 0 : index
      %c0_17 = arith.constant 0 : index
      %23 = vector.load %arg6[%c0_16, %c0_17] : memref<8x128xf32, #tpu.memory_space<vmem>>, vector<8x128xf32>
      tpu.vector_store %arg6[%c0_16, %c0_17], %22 {strides = array<i32>} : memref<8x128xf32, #tpu.memory_space<vmem>>, vector<8x128xf32>,
    } else {
    }
    %c0 = arith.constant 0 : index
    %c0_1 = arith.constant 0 : index
    %3 = vector.load %arg2[%c0, %c0_1] : memref<256x128xf32, #tpu.memory_space<vmem>>, vector<256x128xf32>
    %c0_2 = arith.constant 0 : index
    %c0_3 = arith.constant 0 : index
    %4 = vector.load %arg3[%c0_2, %c0_3] : memref<256x128xf32, #tpu.memory_space<vmem>>, vector<256x128xf32>
    %c0_4 = arith.constant 0 : index
    %c0_5 = arith.constant 0 : index
    %5 = vector.load %arg4[%c0_4, %c0_5] : memref<8x256xf32, #tpu.memory_space<vmem>>, vector<8x256xf32>
    %c0_6 = arith.constant 0 : index
    %c0_7 = arith.constant 0 : index
    %6 = vector.load %arg5[%c0_6, %c0_7] : memref<8x256xf32, #tpu.memory_space<vmem>>, vector<8x256xf32>
    %cst = arith.constant dense<0.000000e+00> : vector<8x128xf32>
    %7 = tpu.matmul %5, %3, %cst {dimension_numbers = #tpu.dot_dimension_numbers<[1], [0], [0], [1], [0, 0, 1, 1], [], []>} : vector<8x256xf32>, vector<256x128xf32>, vector<8x128xf32> -> vector<8x128xf32>
    %cst_8 = arith.constant dense<0.000000e+00> : vector<8x128xf32>
    %8 = tpu.matmul %5, %4, %cst_8 {dimension_numbers = #tpu.dot_dimension_numbers<[1], [0], [0], [1], [0, 0, 1, 1], [], []>} : vector<8x256xf32>, vector<256x128xf32>, vector<8x128xf32> -> vector<8x128xf32>
    %cst_9 = arith.constant dense<0.000000e+00> : vector<8x128xf32>
    %9 = tpu.matmul %6, %3, %cst_9 {dimension_numbers = #tpu.dot_dimension_numbers<[1], [0], [0], [1], [0, 0, 1, 1], [], []>} : vector<8x256xf32>, vector<256x128xf32>, vector<8x128xf32> -> vector<8x128xf32>
    %cst_10 = arith.constant dense<0.000000e+00> : vector<8x128xf32>
    %10 = tpu.matmul %6, %4, %cst_10 {dimension_numbers = #tpu.dot_dimension_numbers<[1], [0], [0], [1], [0, 0, 1, 1], [], []>} : vector<8x256xf32>, vector<256x128xf32>, vector<8x128xf32> -> vector<8x128xf32>
    %11 = arith.mulf %7, %7 : vector<8x128xf32>
    %12 = arith.mulf %8, %8 : vector<8x128xf32>
    %13 = arith.addf %11, %12 : vector<8x128xf32>
    %14 = arith.mulf %9, %9 : vector<8x128xf32>
    %15 = arith.mulf %10, %10 : vector<8x128xf32>
    %16 = arith.addf %14, %15 : vector<8x128xf32>
    %c0_11 = arith.constant 0 : index
    %c0_12 = arith.constant 0 : index
    %17 = vector.load %arg6[%c0_11, %c0_12] : memref<8x128xf32, #tpu.memory_space<vmem>>, vector<8x128xf32>
    %18 = arith.subf %13, %16 : vector<8x128xf32>
    %19 = math.absf %18 : vector<8x128xf32>
    %20 = arith.addf %17, %19 : vector<8x128xf32>
    %c0_13 = arith.constant 0 : index
    %c0_14 = arith.constant 0 : index
    %21 = vector.load %arg6[%c0_13, %c0_14] : memref<8x128xf32, #tpu.memory_space<vmem>>, vector<8x128xf32>
    tpu.vector_store %arg6[%c0_13, %c0_14], %20 {strides = array<i32>} : memref<8x128xf32, #tpu.memory_space<vmem>>, vector<8x128xf32>,
    return
  }
  func.func @transform_0(%arg0: i32, %arg1: i32) -> (i32, i32) {
    %c0_i32 = arith.constant 0 : i32
    %c0_i32_0 = arith.constant 0 : i32
    %c0_i32_1 = arith.constant 0 : i32
    return %c0_i32, %c0_i32_0 : i32, i32
  }
  func.func @transform_1(%arg0: i32, %arg1: i32) -> (i32, i32) {
    %c0_i32 = arith.constant 0 : i32
    %c0_i32_0 = arith.constant 0 : i32
    %c0_i32_1 = arith.constant 0 : i32
    return %c0_i32, %c0_i32_0 : i32, i32
  }
  func.func @transform_2(%arg0: i32, %arg1: i32) -> (i32, i32) {
    %c1_i32 = arith.constant 1 : i32
    %0 = arith.muli %arg0, %c1_i32 : i32
    %1 = arith.addi %0, %arg1 : i32
    %c0_i32 = arith.constant 0 : i32
    %c0_i32_0 = arith.constant 0 : i32
    return %1, %c0_i32 : i32, i32
  }
  func.func @transform_3(%arg0: i32, %arg1: i32) -> (i32, i32) {
    %c1_i32 = arith.constant 1 : i32
    %0 = arith.muli %arg0, %c1_i32 : i32
    %1 = arith.addi %0, %arg1 : i32
    %c0_i32 = arith.constant 0 : i32
    %c0_i32_0 = arith.constant 0 : i32
    return %1, %c0_i32 : i32, i32
  }
  func.func @transform_4(%arg0: i32, %arg1: i32) -> (i32, i32) {
    %c0_i32 = arith.constant 0 : i32
    %c0_i32_0 = arith.constant 0 : i32
    return %arg0, %c0_i32 : i32, i32
  }
}

</mosaic_0001>

<bundles_post_ra>
// kernel: freq_loss.1
= control target key start
LH: loop header
LB: loop body
LE: loop exit
PB: predicated region body
PF: predicated region fallthrough
CT: control target
= control target key end

     0   :  { %9 = vsyncpa [#allocation3], 0  ;;  %s748_s15 = smov [#allocation2]   ;;  %s991_s0 = inlined_call_operand.vmem [shape: f32[256,128], index: 0, kind: input, shape index: {}]   ;;  %s992_s1 = inlined_call_operand.hbm [shape: f32[256,128], index: 1, kind: input, shape index: {}]   ;;  %s993_s2 = inlined_call_operand.vmem [shape: f32[8,256], index: 2, kind: input, shape index: {}]   ;;  %s994_s3 = inlined_call_operand.vmem [shape: f32[8,256], index: 3, kind: input, shape index: {}]   ;;  %s995_s4 = inlined_call_operand.vmem [shape: f32[8,128], index: 4, kind: output, shape index: {}]  }
   0x1   :  { %s17_s16 = sshll.u32 %s748_s15, 4  ;;  %s724_s19 = scalar_lea.hbm %s992_s1, 4096  ;;  %s18_s16 = int_to_ptr.vmem [resolvable:$true] %s17_s16 }
   0x2   :  { %p725_p0 = scmp.ne.s32.totalorder %s992_s1, %s724_s19  ;;  %p728_p1 = scmp.lt.u32.totalorder %s724_s19, %s992_s1 }
   0x4   :  { %p730_p2 = pnand %p728_p1, %p725_p0 }
   0x6   :  { %733 = shalt.err (!%p730_p2)
}
   0x7   :  { %s734_s24 = scalar_lea.vmem %s18_s16, 4096  ;;  %p739_p4 = scmp.lt.s32.totalorder %s18_s16, %s18_s16 }
   0x8   :  { %p735_p3 = scmp.ne.s32.totalorder %s18_s16, %s734_s24  ;;  %p740_p5 = scmp.lt.s32.totalorder %s734_s24, %s734_s24 }
   0xa   :  { %p741_p6 = por %p740_p5, %p739_p4 }
   0xc   :  { %p742_p7 = pnand %p741_p6, %p735_p3 }
   0xe   :  { %745 = shalt.err (!%p742_p7)
}
   0xf   :  { %s749_s25 = smov 128   ;;  %s750_s26 = smov 8  }
  0x10   :  { %23 = dma.hbm_to_vmem [thread:$0]  %s992_s1, 4096, %s18_s16, [#allocation3], %s749_s25, %s749_s25, %s750_s26  }
  0x11   :  { %746 = dma.done.wait [#allocation3], 4096  }
  0x12   :  { %747 = vsyncadd [#allocation3], 4294963200  ;;  %v92_v0 = vld [vmem:[%s991_s0 + $0x80] sm:$0xff]  ;;  %v93_v1 = vld [vmem:[%s991_s0 + $0x88] sm:$0xff] }
  0x13   :  { %v124_v2 = vld [vmem:[#allocation2 + $0x80] sm:$0xff]  ;;  %v794_v3 = vpack.c.bf16 %v93_v1, %v92_v0  ;;  %v125_v4 = vld [vmem:[#allocation2 + $0x88] sm:$0xff]  ;;  %v94_v11 = vld [vmem:[%s991_s0 + $0x90] sm:$0xff] }
  0x14   :  { %v76_v5 = vld [vmem:[%s991_s0] sm:$0xff]  ;;  %v77_v6 = vld [vmem:[%s991_s0 + $0x8] sm:$0xff]  ;;  %v802_v7 = vpack.c.bf16 %v125_v4, %v124_v2  ;;  %v95_v13 = vld [vmem:[%s991_s0 + $0x98] sm:$0xff] }
  0x15   :  { %v804_v8 = vpack.c.bf16 %v77_v6, %v76_v5  ;;  %v108_v9 = vld [vmem:[#allocation2] sm:$0xff]  ;;  %v109_v10 = vld [vmem:[#allocation2 + $0x8] sm:$0xff]  ;;  %593 = vmatprep.subr.bf16.mxu0 %v794_v3  ;;  %v126_v14 = vld [vmem:[#allocation2 + $0x90] sm:$0xff]  ;;  %v817_v16 = vpack.c.bf16 %v95_v13, %v94_v11 }
  0x16   :  { %v810_v12 = vpack.c.bf16 %v109_v10, %v108_v9  ;;  %v127_v15 = vld [vmem:[#allocation2 + $0x98] sm:$0xff]  ;;  %625 = vmatprep.subr.bf16.mxu1 %v802_v7  ;;  %v78_v18 = vld [vmem:[%s991_s0 + $0x10] sm:$0xff]  ;;  %v96_v23 = vld [vmem:[%s991_s0 + $0xa0] sm:$0xff] }
  0x17   :  { %595 = vmatpush3.bf16.msra.mxu0 %v804_v8  ;;  %v819_v17 = vpack.c.bf16 %v127_v15, %v126_v14  ;;  %v79_v19 = vld [vmem:[%s991_s0 + $0x18] sm:$0xff]  ;;  %v110_v20 = vld [vmem:[#allocation2 + $0x10] sm:$0xff]  ;;  %v97_v24 = vld [vmem:[%s991_s0 + $0xa8] sm:$0xff] }
  0x18   :  { %627 = vmatpush3.bf16.msra.mxu1 %v810_v12  ;;  %v828_v21 = vpack.c.bf16 %v79_v19, %v78_v18  ;;  %v111_v22 = vld [vmem:[#allocation2 + $0x18] sm:$0xff]  ;;  %597 = vmatprep.subr.bf16.mxu0 %v817_v16  ;;  %v840_v26 = vpack.c.bf16 %v97_v24, %v96_v23  ;;  %v128_v27 = vld [vmem:[#allocation2 + $0xa0] sm:$0xff]  ;;  %v129_v28 = vld [vmem:[#allocation2 + $0xa8] sm:$0xff] }
  0x19   :  { %629 = vmatprep.subr.bf16.mxu1 %v819_v17  ;;  %v838_v25 = vpack.c.bf16 %v111_v22, %v110_v20  ;;  %v80_v29 = vld [vmem:[%s991_s0 + $0x20] sm:$0xff]  ;;  %v845_v30 = vpack.c.bf16 %v129_v28, %v128_v27  ;;  %v81_v31 = vld [vmem:[%s991_s0 + $0x28] sm:$0xff]  ;;  %v98_v35 = vld [vmem:[%s991_s0 + $0xb0] sm:$0xff] }
  0x1a   :  { %v112_v32 = vld [vmem:[#allocation2 + $0x20] sm:$0xff]  ;;  %v113_v33 = vld [vmem:[#allocation2 + $0x28] sm:$0xff]  ;;  %v851_v34 = vpack.c.bf16 %v81_v31, %v80_v29  ;;  %v99_v36 = vld [vmem:[%s991_s0 + $0xb8] sm:$0xff] }
  0x1b   :  { %599 = vmatpush3.bf16.msra.mxu0 %v828_v21  ;;  %v130_v37 = vld [vmem:[#allocation2 + $0xb0] sm:$0xff]  ;;  %v861_v38 = vpack.c.bf16 %v113_v33, %v112_v32  ;;  %v863_v39 = vpack.c.bf16 %v99_v36, %v98_v35  ;;  %v131_v40 = vld [vmem:[#allocation2 + $0xb8] sm:$0xff]  ;;  %v100_v46 = vld [vmem:[%s991_s0 + $0xc0] sm:$0xff] }
  0x1c   :  { %631 = vmatpush3.bf16.msra.mxu1 %v838_v25  ;;  %601 = vmatprep.subr.bf16.mxu0 %v840_v26  ;;  %v82_v41 = vld [vmem:[%s991_s0 + $0x30] sm:$0xff]  ;;  %v83_v42 = vld [vmem:[%s991_s0 + $0x38] sm:$0xff]  ;;  %v872_v43 = vpack.c.bf16 %v131_v40, %v130_v37  ;;  %v101_v47 = vld [vmem:[%s991_s0 + $0xc8] sm:$0xff] }
  0x1d   :  { %633 = vmatprep.subr.bf16.mxu1 %v845_v30  ;;  %v114_v44 = vld [vmem:[#allocation2 + $0x30] sm:$0xff]  ;;  %v115_v45 = vld [vmem:[#allocation2 + $0x38] sm:$0xff]  ;;  %v132_v48 = vld [vmem:[#allocation2 + $0xc0] sm:$0xff]  ;;  %v881_v50 = vpack.c.bf16 %v83_v42, %v82_v41  ;;  %v887_v52 = vpack.c.bf16 %v101_v47, %v100_v46 }
  0x1e   :  { %v133_v49 = vld [vmem:[#allocation2 + $0xc8] sm:$0xff]  ;;  %v885_v51 = vpack.c.bf16 %v115_v45, %v114_v44  ;;  %v84_v53 = vld [vmem:[%s991_s0 + $0x40] sm:$0xff]  ;;  %v102_v58 = vld [vmem:[%s991_s0 + $0xd0] sm:$0xff] }
  0x1f   :  { %603 = vmatpush3.bf16.msra.mxu0 %v851_v34  ;;  %v85_v54 = vld [vmem:[%s991_s0 + $0x48] sm:$0xff]  ;;  %v116_v55 = vld [vmem:[#allocation2 + $0x40] sm:$0xff]  ;;  %v896_v56 = vpack.c.bf16 %v133_v49, %v132_v48  ;;  %v103_v59 = vld [vmem:[%s991_s0 + $0xd8] sm:$0xff] }
  0x20   :  { %635 = vmatpush3.bf16.msra.mxu1 %v861_v38  ;;  %605 = vmatprep.subr.bf16.mxu0 %v863_v39  ;;  %v117_v57 = vld [vmem:[#allocation2 + $0x48] sm:$0xff]  ;;  %v134_v60 = vld [vmem:[#allocation2 + $0xd0] sm:$0xff]  ;;  %v135_v61 = vld [vmem:[#allocation2 + $0xd8] sm:$0xff]  ;;  %v905_v62 = vpack.c.bf16 %v85_v54, %v84_v53  ;;  %v911_v0 = vpack.c.bf16 %v103_v59, %v102_v58 }
  0x21   :  { %637 = vmatprep.subr.bf16.mxu1 %v872_v43  ;;  %v909_v63 = vpack.c.bf16 %v117_v57, %v116_v55  ;;  %v86_v1 = vld [vmem:[%s991_s0 + $0x50] sm:$0xff]  ;;  %v87_v2 = vld [vmem:[%s991_s0 + $0x58] sm:$0xff]  ;;  %v920_v5 = vpack.c.bf16 %v135_v61, %v134_v60  ;;  %v104_v9 = vld [vmem:[%s991_s0 + $0xe0] sm:$0xff] }
  0x22   :  { %v118_v4 = vld [vmem:[#allocation2 + $0x50] sm:$0xff]  ;;  %v119_v6 = vld [vmem:[#allocation2 + $0x58] sm:$0xff]  ;;  %v105_v10 = vld [vmem:[%s991_s0 + $0xe8] sm:$0xff]  ;;  %v929_v14 = vpack.c.bf16 %v87_v2, %v86_v1 }
  0x23   :  { %607 = vmatpush3.bf16.msra.mxu0 %v881_v50  ;;  %v136_v11 = vld [vmem:[#allocation2 + $0xe0] sm:$0xff]  ;;  %v137_v13 = vld [vmem:[#allocation2 + $0xe8] sm:$0xff]  ;;  %v646_v18 = vpack.c.bf16 %v119_v6, %v118_v4  ;;  %v616_v19 = vpack.c.bf16 %v105_v10, %v104_v9  ;;  %v106_v28 = vld [vmem:[%s991_s0 + $0xf0] sm:$0xff] }
  0x24   :  { %639 = vmatpush3.bf16.msra.mxu1 %v885_v51  ;;  %609 = vmatprep.subr.bf16.mxu0 %v887_v52  ;;  %v88_v15 = vld [vmem:[%s991_s0 + $0x60] sm:$0xff]  ;;  %v89_v20 = vld [vmem:[%s991_s0 + $0x68] sm:$0xff]  ;;  %v648_v24 = vpack.c.bf16 %v137_v13, %v136_v11  ;;  %v107_v29 = vld [vmem:[%s991_s0 + $0xf8] sm:$0xff] }
  0x25   :  { %641 = vmatprep.subr.bf16.mxu1 %v896_v56  ;;  %v120_v22 = vld [vmem:[#allocation2 + $0x60] sm:$0xff]  ;;  %v141_v23 = vld [vmem:[%s993_s2 + $0x8] sm:$0xff]  ;;  %v138_v31 = vld [vmem:[#allocation2 + $0xf0] sm:$0xff]  ;;  %v618_v33 = vpack.c.bf16 %v89_v20, %v88_v15  ;;  %v620_v36 = vpack.c.bf16 %v107_v29, %v106_v28 }
  0x26   :  { %v121_v27 = vld [vmem:[#allocation2 + $0x68] sm:$0xff]  ;;  %208 = vmatprep.mubr.f32.mxu0 %v141_v23  ;;  %v139_v32 = vld [vmem:[#allocation2 + $0xf8] sm:$0xff]  ;;  %278 = vmatprep.mubr.f32.mxu1 %v141_v23  ;;  %v90_v37 = vld [vmem:[%s991_s0 + $0x70] sm:$0xff] }
  0x27   :  { %611 = vmatpush3.bf16.msra.mxu0 %v905_v62  ;;  %v650_v35 = vpack.c.bf16 %v121_v27, %v120_v22  ;;  %v91_v40 = vld [vmem:[%s991_s0 + $0x78] sm:$0xff]  ;;  %v652_v41 = vpack.c.bf16 %v139_v32, %v138_v31  ;;  %v122_v42 = vld [vmem:[#allocation2 + $0x70] sm:$0xff]  ;;  %v140_v47 = vld [vmem:[%s993_s2] sm:$0xff] }
  0x28   :  { %643 = vmatpush3.bf16.msra.mxu1 %v909_v63  ;;  %613 = vmatprep.subr.bf16.mxu0 %v911_v0  ;;  %v123_v44 = vld [vmem:[#allocation2 + $0x78] sm:$0xff]  ;;  %v622_v45 = vpack.c.bf16 %v91_v40, %v90_v37  ;;  %v143_v48 = vld [vmem:[%s994_s3 + $0x8] sm:$0xff] }
  0x29   :  { %645 = vmatprep.subr.bf16.mxu1 %v920_v5  ;;  %v654_v46 = vpack.c.bf16 %v123_v44, %v122_v42 }
  0x2b   :  { %615 = vmatpush3.bf16.msra.mxu0 %v929_v14 }
  0x2c   :  { %647 = vmatpush3.bf16.msra.mxu1 %v646_v18  ;;  %617 = vmatprep.subr.bf16.mxu0 %v616_v19 }
  0x2d   :  { %649 = vmatprep.subr.bf16.mxu1 %v648_v24 }
  0x2f   :  { %619 = vmatpush3.bf16.msra.mxu0 %v618_v33 }
  0x30   :  { %651 = vmatpush3.bf16.msra.mxu1 %v650_v35  ;;  %621 = vmatprep.subr.bf16.mxu0 %v620_v36 }
  0x31   :  { %653 = vmatprep.subr.bf16.mxu1 %v652_v41 }
  0x33   :  { %623 = vmatpush3.bf16.msra.mxu0 %v622_v45 }
  0x34   :  { %655 = vmatpush3.bf16.msra.mxu1 %v654_v46  ;;  %657 = vmatprep.subr.bf16.mxu0 %v794_v3  ;;  %v142_v3 = vld [vmem:[%s994_s3] sm:$0xff] }
  0x35   :  { %689 = vmatprep.subr.bf16.mxu1 %v802_v7 }
  0x36   :  { %209 = vmatmul.mubr.f32.vlgmr.msra.gmra.mrb[0].mxu0 %v140_v47 }
  0x37   :  { %279 = vmatmul.mubr.f32.vlgmr.msra.gmra.mrb[0].mxu1 %v140_v47  ;;  %659 = vmatpush3.bf16.msra.mxu0 %v804_v8 }
  0x38   :  { %691 = vmatpush3.bf16.msra.mxu1 %v810_v12  ;;  %661 = vmatprep.subr.bf16.mxu0 %v817_v16 }
  0x39   :  { %693 = vmatprep.subr.bf16.mxu1 %v819_v17  ;;  %348 = vmatprep.mubr.f32.mxu0 %v143_v48 }
  0x3a   :  { %418 = vmatprep.mubr.f32.mxu1 %v143_v48 }
  0x3b   :  { %663 = vmatpush3.bf16.msra.mxu0 %v828_v21 }
  0x3c   :  { %695 = vmatpush3.bf16.msra.mxu1 %v838_v25  ;;  %665 = vmatprep.subr.bf16.mxu0 %v840_v26 }
  0x3d   :  { %697 = vmatprep.subr.bf16.mxu1 %v845_v30 }
  0x3f   :  { %667 = vmatpush3.bf16.msra.mxu0 %v851_v34 }
  0x40   :  { %699 = vmatpush3.bf16.msra.mxu1 %v861_v38  ;;  %669 = vmatprep.subr.bf16.mxu0 %v863_v39 }
  0x41   :  { %701 = vmatprep.subr.bf16.mxu1 %v872_v43 }
  0x43   :  { %671 = vmatpush3.bf16.msra.mxu0 %v881_v50 }
  0x44   :  { %703 = vmatpush3.bf16.msra.mxu1 %v885_v51  ;;  %673 = vmatprep.subr.bf16.mxu0 %v887_v52 }
  0x45   :  { %705 = vmatprep.subr.bf16.mxu1 %v896_v56 }
  0x47   :  { %675 = vmatpush3.bf16.msra.mxu0 %v905_v62 }
  0x48   :  { %707 = vmatpush3.bf16.msra.mxu1 %v909_v63  ;;  %677 = vmatprep.subr.bf16.mxu0 %v911_v0 }
  0x49   :  { %709 = vmatprep.subr.bf16.mxu1 %v920_v5 }
  0x4b   :  { %679 = vmatpush3.bf16.msra.mxu0 %v929_v14 }
  0x4c   :  { %711 = vmatpush3.bf16.msra.mxu1 %v646_v18  ;;  %681 = vmatprep.subr.bf16.mxu0 %v616_v19 }
  0x4d   :  { %713 = vmatprep.subr.bf16.mxu1 %v648_v24 }
  0x4f   :  { %683 = vmatpush3.bf16.msra.mxu0 %v618_v33 }
  0x50   :  { %715 = vmatpush3.bf16.msra.mxu1 %v650_v35  ;;  %685 = vmatprep.subr.bf16.mxu0 %v620_v36 }
  0x51   :  { %717 = vmatprep.subr.bf16.mxu1 %v652_v41 }
  0x53   :  { %687 = vmatpush3.bf16.msra.mxu0 %v622_v45 }
  0x54   :  { %719 = vmatpush3.bf16.msra.mxu1 %v654_v46 }
  0x56   :  { %349 = vmatmul.mubr.f32.vlgmr.msra.gmra.mrb[2].mxu0 %v142_v3 }
  0x57   :  { %419 = vmatmul.mubr.f32.vlgmr.msra.gmra.mrb[2].mxu1 %v142_v3 }
 0x109   :  { %v484_v7 = vpop.f32.mrb[0].mxu0 }
 0x10a   :  { %v519_v8 = vpop.f32.mrb[0].mxu1  ;;  %v485_v12 = vpop.f32.mrb[1].mxu0 }
 0x10b   :  { %v486_v16 = vadd.f32 %v485_v12, %v484_v7  ;;  %v520_v17 = vpop.f32.mrb[1].mxu1 }
 0x10c   :  { %v521_v21 = vadd.f32 %v520_v17, %v519_v8 }
 0x10d   :  { %v424_v25 = vmul.f32 %v486_v16, %v486_v16 }
 0x10e   :  { %v425_v26 = vmul.f32 %v521_v21, %v521_v21 }
 0x110   :  { %v426_v30 = vadd.f32 %v425_v26, %v424_v25 }
 0x129   :  { %v554_v34 = vpop.f32.mrb[2].mxu0 }
 0x12a   :  { %v589_v38 = vpop.f32.mrb[2].mxu1  ;;  %v555_v39 = vpop.f32.mrb[3].mxu0 }
 0x12b   :  { %v556_v43 = vadd.f32 %v555_v39, %v554_v34  ;;  %v590_v49 = vpop.f32.mrb[3].mxu1 }
 0x12c   :  { %v591_v50 = vadd.f32 %v590_v49, %v589_v38 }
 0x12d   :  { %v427_v51 = vmul.f32 %v556_v43, %v556_v43 }
 0x12e   :  { %v428_v52 = vmul.f32 %v591_v50, %v591_v50 }
 0x130   :  { %v429_v53 = vadd.f32 %v428_v52, %v427_v51 }
 0x132   :  { %v431_v54 = vsub.f32 %v426_v30, %v429_v53 }
 0x134   :  { %v432_v55 = vand.u32 2147483647, %v431_v54 }
 0x136   :  { %434 = vst [vmem:[%s995_s4] sm:$0xff] %v432_v55 }
 0x137   :  { %439 = vsyncpa [#allocation3], 1 }

</bundles_post_ra>
